<compile_context>
chip_gen: v7x
topology: tpu7x:2x2x1
jax: 0.10.0
libtpu: 0.0.40
codegen_flags: <defaults>
</compile_context>

<pallas_src>
import functools

import jax
import jax.numpy as jnp
from jax.experimental import pallas as pl
from jax.experimental.pallas import tpu as pltpu

NUM_CONV = 6
CHANNEL = 6
K = 1
HIDDEN = 2 * K * NUM_CONV      # 12
OUT = K * NUM_CONV             # 6


def _attention_kernel(x_ref, w1_ref, b1_ref, w2_ref, b2_ref, o_ref, acc_ref,
                      *, batch, channel, hidden, out):
    # x_ref: (B*C, TILE_HW) current HW chunk (native dtype)
    # w1_ref: (C, HIDDEN) with the 1/(H*W) mean scale pre-folded (f32)
    # b1_ref: (1, HIDDEN)   w2_ref: (HIDDEN, OUT)   b2_ref: (1, OUT)
    # o_ref: (B, OUT)       acc_ref: (B*C, 1) f32 pooled-sum accumulator
    k = pl.program_id(0)

    @pl.when(k == 0)
    def _init():
        acc_ref[...] = jnp.zeros_like(acc_ref)

    # Per-chunk partial sum over the lane (HW) axis; upcast per chunk only.
    chunk = x_ref[...]
    acc_ref[...] += jnp.sum(chunk.astype(jnp.float32), axis=-1, keepdims=True)

    @pl.when(k == pl.num_programs(0) - 1)
    def _epilogue():
        w1 = w1_ref[...].astype(jnp.float32)
        b1 = b1_ref[...].astype(jnp.float32)
        w2 = w2_ref[...].astype(jnp.float32)
        b2 = b2_ref[...].astype(jnp.float32)

        # First linear on the VPU/XLU: h[b, :] = sum_c acc[b*C + c] * w1[c, :]
        # (contraction dim = C = 6; a jnp.dot here would waste the whole MXU).
        rows = []
        for b in range(batch):
            s_b = acc_ref[b * channel:(b + 1) * channel, :]          # (C, 1) f32
            rows.append(jnp.sum(s_b * w1, axis=0, keepdims=True))    # (1, HIDDEN)
        h = rows[0] if batch == 1 else jnp.concatenate(rows, axis=0)  # (B, HIDDEN)
        h = jnp.maximum(h + b1, 0.0)                                  # ReLU (f32)

        # Second linear, unrolled over the 12-wide contraction (pure VPU FMAs).
        y = jnp.zeros((batch, out), jnp.float32)
        for j in range(hidden):
            y = y + h[:, j:j + 1] * w2[j:j + 1, :]
        y = y + b2
        o_ref[...] = y.astype(o_ref.dtype)


def attention_module(x, w1, b1, w2, b2, *, max_tile_hw=1024):
    """x: [B, C, H, W] NCHW. Returns [B, k, num_conv]."""
    B, C, H, W = x.shape
    HW = H * W
    BC = B * C
    hidden = w1.shape[1]
    out = w2.shape[1]

    # Fold the 1/(H*W) mean scale into w1 host-side; kernel only needs a sum.
    w1s = w1.astype(jnp.float32) / float(HW)

    # Free reshape (no transpose / no extra HBM traffic): dense sublane packing.
    x_flat = x.reshape(BC, HW)

    # Lane tile: multiple of 128 (BlockSpec rule), capped so the double-buffered
    # x stream stays far below v7x's 64 MiB VMEM even for large B*C.
    tile_hw = min(max_tile_hw, ((HW + 127) // 128) * 128)
    hw_pad = pl.cdiv(HW, tile_hw) * tile_hw
    if hw_pad != HW:
        # Zero padding is safe: the kernel sums and the mean scale is folded.
        x_flat = jnp.pad(x_flat, ((0, 0), (0, hw_pad - HW)))
    n_chunks = hw_pad // tile_hw

    kernel = functools.partial(_attention_kernel, batch=B, channel=C,
                               hidden=hidden, out=out)

    y = pl.pallas_call(
        kernel,
        out_shape=jax.ShapeDtypeStruct((B, out), x.dtype),
        grid_spec=pltpu.PrefetchScalarGridSpec(
            num_scalar_prefetch=0,
            grid=(n_chunks,),
            in_specs=[
                pl.BlockSpec((BC, tile_hw), lambda k: (0, k)),   # streamed x chunks
                pl.BlockSpec((C, hidden), lambda k: (0, 0)),     # w1 (fetched once)
                pl.BlockSpec((1, hidden), lambda k: (0, 0)),     # b1
                pl.BlockSpec((hidden, out), lambda k: (0, 0)),   # w2
                pl.BlockSpec((1, out), lambda k: (0, 0)),        # b2
            ],
            out_specs=pl.BlockSpec((B, out), lambda k: (0, 0)),
            scratch_shapes=[pltpu.VMEM((BC, 1), jnp.float32)],
        ),
        compiler_params=pltpu.CompilerParams(
            dimension_semantics=("arbitrary",),   # HW axis is a reduction
        ),
    )(x_flat, w1s, b1, w2, b2)
    return y.reshape(-1, K, NUM_CONV)


def init_params(key):
    # Deterministic init mirroring nn.Linear's uniform(-1/sqrt(fan_in), ...)
    k1, k2, k3, k4 = jax.random.split(key, 4)
    bound1 = 1.0 / jnp.sqrt(CHANNEL)
    bound2 = 1.0 / jnp.sqrt(HIDDEN)
    w1 = jax.random.uniform(k1, (CHANNEL, HIDDEN), jnp.float32, -bound1, bound1)
    b1 = jax.random.uniform(k2, (1, HIDDEN), jnp.float32, -bound1, bound1)
    w2 = jax.random.uniform(k3, (HIDDEN, OUT), jnp.float32, -bound2, bound2)
    b2 = jax.random.uniform(k4, (1, OUT), jnp.float32, -bound2, bound2)
    return w1, b1, w2, b2


if __name__ == "__main__":
    key = jax.random.PRNGKey(0)
    kx, kp = jax.random.split(key)
    B, C, H, W = 2, CHANNEL, 16, 16
    x = jax.random.normal(kx, (B, C, H, W), jnp.float32)
    w1, b1, w2, b2 = init_params(kp)

    y = attention_module(x, w1, b1, w2, b2)
    jax.block_until_ready(y)

    # Reference check in plain JAX (original, unscaled weights + true mean).
    pooled = jnp.mean(x, axis=(2, 3))
    h = jnp.maximum(pooled @ w1 + b1, 0.0)
    y_ref = (h @ w2 + b2).reshape(-1, K, NUM_CONV)
    assert y.shape == (B, K, NUM_CONV)
    assert jnp.allclose(y, y_ref, atol=1e-5), "mismatch vs reference"

    print("KERNEL_OK")
</pallas_src>

<mosaic_0001>
module attributes {stable_mosaic.version = 11 : i64} {
  func.func @_attention_kernel(%arg0: i32, %arg1: memref<12x256xf32, #tpu.memory_space<vmem>>, %arg2: memref<6x12xf32, #tpu.memory_space<vmem>>, %arg3: memref<1x12xf32, #tpu.memory_space<vmem>>, %arg4: memref<12x6xf32, #tpu.memory_space<vmem>>, %arg5: memref<1x6xf32, #tpu.memory_space<vmem>>, %arg6: memref<2x6xf32, #tpu.memory_space<vmem>>, %arg7: memref<12x1xf32, #tpu.memory_space<vmem>>) attributes {dimension_semantics = [#tpu.dimension_semantics<arbitrary>], iteration_bounds = array<i64: 1>, scalar_prefetch = 0 : i64, scratch_operands = 1 : i64, tpu.core_type = #tpu.core_type<tc>, window_params = [{transform_indices = @transform_0, window_bounds = array<i64: 12, 256>}, {pipeline_mode = #tpu.pipeline_mode<synchronous>, transform_indices = @transform_1, window_bounds = array<i64: 6, 12>}, {pipeline_mode = #tpu.pipeline_mode<synchronous>, transform_indices = @transform_2, window_bounds = array<i64: 1, 12>}, {pipeline_mode = #tpu.pipeline_mode<synchronous>, transform_indices = @transform_3, window_bounds = array<i64: 12, 6>}, {pipeline_mode = #tpu.pipeline_mode<synchronous>, transform_indices = @transform_4, window_bounds = array<i64: 1, 6>}, {pipeline_mode = #tpu.pipeline_mode<synchronous>, transform_indices = @transform_5, window_bounds = array<i64: 2, 6>}]} {
    %c0_i32 = arith.constant 0 : i32
    %0 = arith.cmpi eq, %arg0, %c0_i32 : i32
    %1 = arith.extui %0 : i1 to i32
    %c0_i32_0 = arith.constant 0 : i32
    %2 = arith.cmpi ne, %1, %c0_i32_0 : i32
    scf.if %2 {
      %cst_8 = arith.constant 0.000000e+00 : f32
      %12 = vector.broadcast %cst_8 : f32 to vector<12x1xf32>
      %c0_9 = arith.constant 0 : index
      %c0_10 = arith.constant 0 : index
      %13 = vector.load %arg7[%c0_9, %c0_10] : memref<12x1xf32, #tpu.memory_space<vmem>>, vector<12x1xf32>
      tpu.vector_store %arg7[%c0_9, %c0_10], %12 {strides = array<i32>} : memref<12x1xf32, #tpu.memory_space<vmem>>, vector<12x1xf32>,
    } else {
    }
    %c0 = arith.constant 0 : index
    %c0_1 = arith.constant 0 : index
    %3 = vector.load %arg1[%c0, %c0_1] : memref<12x256xf32, #tpu.memory_space<vmem>>, vector<12x256xf32>
    %c0_2 = arith.constant 0 : index
    %c0_3 = arith.constant 0 : index
    %4 = vector.load %arg7[%c0_2, %c0_3] : memref<12x1xf32, #tpu.memory_space<vmem>>, vector<12x1xf32>
    %cst = arith.constant dense<0.000000e+00> : vector<12xf32>
    %5 = vector.multi_reduction <add>, %3, %cst [1] : vector<12x256xf32> to vector<12xf32>
    %6 = vector.shape_cast %5 : vector<12xf32> to vector<12x1xf32>
    %7 = arith.addf %4, %6 : vector<12x1xf32>
    %c0_4 = arith.constant 0 : index
    %c0_5 = arith.constant 0 : index
    %8 = vector.load %arg7[%c0_4, %c0_5] : memref<12x1xf32, #tpu.memory_space<vmem>>, vector<12x1xf32>
    tpu.vector_store %arg7[%c0_4, %c0_5], %7 {strides = array<i32>} : memref<12x1xf32, #tpu.memory_space<vmem>>, vector<12x1xf32>,
    %c0_i32_6 = arith.constant 0 : i32
    %9 = arith.cmpi eq, %arg0, %c0_i32_6 : i32
    %10 = arith.extui %9 : i1 to i32
    %c0_i32_7 = arith.constant 0 : i32
    %11 = arith.cmpi ne, %10, %c0_i32_7 : i32
    scf.if %11 {
      %c0_8 = arith.constant 0 : index
      %c0_9 = arith.constant 0 : index
      %12 = vector.load %arg2[%c0_8, %c0_9] : memref<6x12xf32, #tpu.memory_space<vmem>>, vector<6x12xf32>
      %c0_10 = arith.constant 0 : index
      %c0_11 = arith.constant 0 : index
      %13 = vector.load %arg3[%c0_10, %c0_11] : memref<1x12xf32, #tpu.memory_space<vmem>>, vector<1x12xf32>
      %c0_12 = arith.constant 0 : index
      %c0_13 = arith.constant 0 : index
      %14 = vector.load %arg4[%c0_12, %c0_13] : memref<12x6xf32, #tpu.memory_space<vmem>>, vector<12x6xf32>
      %c0_14 = arith.constant 0 : index
      %c0_15 = arith.constant 0 : index
      %15 = vector.load %arg5[%c0_14, %c0_15] : memref<1x6xf32, #tpu.memory_space<vmem>>, vector<1x6xf32>
      %c0_16 = arith.constant 0 : index
      %c0_17 = arith.constant 0 : index
      %16 = vector.load %arg7[%c0_16, %c0_17] : memref<12x1xf32, #tpu.memory_space<vmem>>, vector<6x1xf32>
      %17 = vector.broadcast %16 : vector<6x1xf32> to vector<6x12xf32>
      %18 = arith.mulf %17, %12 : vector<6x12xf32>
      %cst_18 = arith.constant dense<0.000000e+00> : vector<12xf32>
      %19 = vector.multi_reduction <add>, %18, %cst_18 [0] : vector<6x12xf32> to vector<12xf32>
      %20 = vector.shape_cast %19 : vector<12xf32> to vector<1x12xf32>
      %c6 = arith.constant 6 : index
      %c0_19 = arith.constant 0 : index
      %21 = vector.load %arg7[%c6, %c0_19] : memref<12x1xf32, #tpu.memory_space<vmem>>, vector<6x1xf32>
      %22 = vector.broadcast %21 : vector<6x1xf32> to vector<6x12xf32>
      %23 = arith.mulf %22, %12 : vector<6x12xf32>
      %cst_20 = arith.constant dense<0.000000e+00> : vector<12xf32>
      %24 = vector.multi_reduction <add>, %23, %cst_20 [0] : vector<6x12xf32> to vector<12xf32>
      %25 = vector.shape_cast %24 : vector<12xf32> to vector<1x12xf32>
      %26 = tpu.concatenate %20, %25 in 0 : vector<1x12xf32>, vector<1x12xf32> -> vector<2x12xf32>
      %27 = vector.broadcast %13 : vector<1x12xf32> to vector<2x12xf32>
      %28 = arith.addf %26, %27 : vector<2x12xf32>
      %cst_21 = arith.constant 0.000000e+00 : f32
      %29 = vector.broadcast %cst_21 : f32 to vector<2x12xf32>
      %30 = arith.maximumf %28, %29 : vector<2x12xf32>
      %cst_22 = arith.constant 0.000000e+00 : f32
      %31 = vector.broadcast %cst_22 : f32 to vector<2x6xf32>
      %32 = vector.extract_strided_slice %30 {offsets = [0, 0], sizes = [2, 1], strides = [1, 1]} : vector<2x12xf32> to vector<2x1xf32>
      %33 = vector.extract_strided_slice %14 {offsets = [0, 0], sizes = [1, 6], strides = [1, 1]} : vector<12x6xf32> to vector<1x6xf32>
      %34 = vector.broadcast %32 : vector<2x1xf32> to vector<2x6xf32>
      %35 = vector.broadcast %33 : vector<1x6xf32> to vector<2x6xf32>
      %36 = arith.mulf %34, %35 : vector<2x6xf32>
      %37 = arith.addf %31, %36 : vector<2x6xf32>
      %38 = vector.extract_strided_slice %30 {offsets = [0, 1], sizes = [2, 1], strides = [1, 1]} : vector<2x12xf32> to vector<2x1xf32>
      %39 = vector.extract_strided_slice %14 {offsets = [1, 0], sizes = [1, 6], strides = [1, 1]} : vector<12x6xf32> to vector<1x6xf32>
      %40 = vector.broadcast %38 : vector<2x1xf32> to vector<2x6xf32>
      %41 = vector.broadcast %39 : vector<1x6xf32> to vector<2x6xf32>
      %42 = arith.mulf %40, %41 : vector<2x6xf32>
      %43 = arith.addf %37, %42 : vector<2x6xf32>
      %44 = vector.extract_strided_slice %30 {offsets = [0, 2], sizes = [2, 1], strides = [1, 1]} : vector<2x12xf32> to vector<2x1xf32>
      %45 = vector.extract_strided_slice %14 {offsets = [2, 0], sizes = [1, 6], strides = [1, 1]} : vector<12x6xf32> to vector<1x6xf32>
      %46 = vector.broadcast %44 : vector<2x1xf32> to vector<2x6xf32>
      %47 = vector.broadcast %45 : vector<1x6xf32> to vector<2x6xf32>
      %48 = arith.mulf %46, %47 : vector<2x6xf32>
      %49 = arith.addf %43, %48 : vector<2x6xf32>
      %50 = vector.extract_strided_slice %30 {offsets = [0, 3], sizes = [2, 1], strides = [1, 1]} : vector<2x12xf32> to vector<2x1xf32>
      %51 = vector.extract_strided_slice %14 {offsets = [3, 0], sizes = [1, 6], strides = [1, 1]} : vector<12x6xf32> to vector<1x6xf32>
      %52 = vector.broadcast %50 : vector<2x1xf32> to vector<2x6xf32>
      %53 = vector.broadcast %51 : vector<1x6xf32> to vector<2x6xf32>
      %54 = arith.mulf %52, %53 : vector<2x6xf32>
      %55 = arith.addf %49, %54 : vector<2x6xf32>
      %56 = vector.extract_strided_slice %30 {offsets = [0, 4], sizes = [2, 1], strides = [1, 1]} : vector<2x12xf32> to vector<2x1xf32>
      %57 = vector.extract_strided_slice %14 {offsets = [4, 0], sizes = [1, 6], strides = [1, 1]} : vector<12x6xf32> to vector<1x6xf32>
      %58 = vector.broadcast %56 : vector<2x1xf32> to vector<2x6xf32>
      %59 = vector.broadcast %57 : vector<1x6xf32> to vector<2x6xf32>
      %60 = arith.mulf %58, %59 : vector<2x6xf32>
      %61 = arith.addf %55, %60 : vector<2x6xf32>
      %62 = vector.extract_strided_slice %30 {offsets = [0, 5], sizes = [2, 1], strides = [1, 1]} : vector<2x12xf32> to vector<2x1xf32>
      %63 = vector.extract_strided_slice %14 {offsets = [5, 0], sizes = [1, 6], strides = [1, 1]} : vector<12x6xf32> to vector<1x6xf32>
      %64 = vector.broadcast %62 : vector<2x1xf32> to vector<2x6xf32>
      %65 = vector.broadcast %63 : vector<1x6xf32> to vector<2x6xf32>
      %66 = arith.mulf %64, %65 : vector<2x6xf32>
      %67 = arith.addf %61, %66 : vector<2x6xf32>
      %68 = vector.extract_strided_slice %30 {offsets = [0, 6], sizes = [2, 1], strides = [1, 1]} : vector<2x12xf32> to vector<2x1xf32>
      %69 = vector.extract_strided_slice %14 {offsets = [6, 0], sizes = [1, 6], strides = [1, 1]} : vector<12x6xf32> to vector<1x6xf32>
      %70 = vector.broadcast %68 : vector<2x1xf32> to vector<2x6xf32>
      %71 = vector.broadcast %69 : vector<1x6xf32> to vector<2x6xf32>
      %72 = arith.mulf %70, %71 : vector<2x6xf32>
      %73 = arith.addf %67, %72 : vector<2x6xf32>
      %74 = vector.extract_strided_slice %30 {offsets = [0, 7], sizes = [2, 1], strides = [1, 1]} : vector<2x12xf32> to vector<2x1xf32>
      %75 = vector.extract_strided_slice %14 {offsets = [7, 0], sizes = [1, 6], strides = [1, 1]} : vector<12x6xf32> to vector<1x6xf32>
      %76 = vector.broadcast %74 : vector<2x1xf32> to vector<2x6xf32>
      %77 = vector.broadcast %75 : vector<1x6xf32> to vector<2x6xf32>
      %78 = arith.mulf %76, %77 : vector<2x6xf32>
      %79 = arith.addf %73, %78 : vector<2x6xf32>
      %80 = vector.extract_strided_slice %30 {offsets = [0, 8], sizes = [2, 1], strides = [1, 1]} : vector<2x12xf32> to vector<2x1xf32>
      %81 = vector.extract_strided_slice %14 {offsets = [8, 0], sizes = [1, 6], strides = [1, 1]} : vector<12x6xf32> to vector<1x6xf32>
      %82 = vector.broadcast %80 : vector<2x1xf32> to vector<2x6xf32>
      %83 = vector.broadcast %81 : vector<1x6xf32> to vector<2x6xf32>
      %84 = arith.mulf %82, %83 : vector<2x6xf32>
      %85 = arith.addf %79, %84 : vector<2x6xf32>
      %86 = vector.extract_strided_slice %30 {offsets = [0, 9], sizes = [2, 1], strides = [1, 1]} : vector<2x12xf32> to vector<2x1xf32>
      %87 = vector.extract_strided_slice %14 {offsets = [9, 0], sizes = [1, 6], strides = [1, 1]} : vector<12x6xf32> to vector<1x6xf32>
      %88 = vector.broadcast %86 : vector<2x1xf32> to vector<2x6xf32>
      %89 = vector.broadcast %87 : vector<1x6xf32> to vector<2x6xf32>
      %90 = arith.mulf %88, %89 : vector<2x6xf32>
      %91 = arith.addf %85, %90 : vector<2x6xf32>
      %92 = vector.extract_strided_slice %30 {offsets = [0, 10], sizes = [2, 1], strides = [1, 1]} : vector<2x12xf32> to vector<2x1xf32>
      %93 = vector.extract_strided_slice %14 {offsets = [10, 0], sizes = [1, 6], strides = [1, 1]} : vector<12x6xf32> to vector<1x6xf32>
      %94 = vector.broadcast %92 : vector<2x1xf32> to vector<2x6xf32>
      %95 = vector.broadcast %93 : vector<1x6xf32> to vector<2x6xf32>
      %96 = arith.mulf %94, %95 : vector<2x6xf32>
      %97 = arith.addf %91, %96 : vector<2x6xf32>
      %98 = vector.extract_strided_slice %30 {offsets = [0, 11], sizes = [2, 1], strides = [1, 1]} : vector<2x12xf32> to vector<2x1xf32>
      %99 = vector.extract_strided_slice %14 {offsets = [11, 0], sizes = [1, 6], strides = [1, 1]} : vector<12x6xf32> to vector<1x6xf32>
      %100 = vector.broadcast %98 : vector<2x1xf32> to vector<2x6xf32>
      %101 = vector.broadcast %99 : vector<1x6xf32> to vector<2x6xf32>
      %102 = arith.mulf %100, %101 : vector<2x6xf32>
      %103 = arith.addf %97, %102 : vector<2x6xf32>
      %104 = vector.broadcast %15 : vector<1x6xf32> to vector<2x6xf32>
      %105 = arith.addf %103, %104 : vector<2x6xf32>
      %c0_23 = arith.constant 0 : index
      %c0_24 = arith.constant 0 : index
      %106 = vector.load %arg6[%c0_23, %c0_24] : memref<2x6xf32, #tpu.memory_space<vmem>>, vector<2x6xf32>
      tpu.vector_store %arg6[%c0_23, %c0_24], %105 {strides = array<i32>} : memref<2x6xf32, #tpu.memory_space<vmem>>, vector<2x6xf32>,
    } else {
    }
    return
  }
  func.func @transform_0(%arg0: i32) -> (i32, i32) {
    %c0_i32 = arith.constant 0 : i32
    %c0_i32_0 = arith.constant 0 : i32
    return %c0_i32, %arg0 : i32, i32
  }
  func.func @transform_1(%arg0: i32) -> (i32, i32) {
    %c0_i32 = arith.constant 0 : i32
    %c0_i32_0 = arith.constant 0 : i32
    %c0_i32_1 = arith.constant 0 : i32
    return %c0_i32, %c0_i32_0 : i32, i32
  }
  func.func @transform_2(%arg0: i32) -> (i32, i32) {
    %c0_i32 = arith.constant 0 : i32
    %c0_i32_0 = arith.constant 0 : i32
    %c0_i32_1 = arith.constant 0 : i32
    return %c0_i32, %c0_i32_0 : i32, i32
  }
  func.func @transform_3(%arg0: i32) -> (i32, i32) {
    %c0_i32 = arith.constant 0 : i32
    %c0_i32_0 = arith.constant 0 : i32
    %c0_i32_1 = arith.constant 0 : i32
    return %c0_i32, %c0_i32_0 : i32, i32
  }
  func.func @transform_4(%arg0: i32) -> (i32, i32) {
    %c0_i32 = arith.constant 0 : i32
    %c0_i32_0 = arith.constant 0 : i32
    %c0_i32_1 = arith.constant 0 : i32
    return %c0_i32, %c0_i32_0 : i32, i32
  }
  func.func @transform_5(%arg0: i32) -> (i32, i32) {
    %c0_i32 = arith.constant 0 : i32
    %c0_i32_0 = arith.constant 0 : i32
    %c0_i32_1 = arith.constant 0 : i32
    return %c0_i32, %c0_i32_0 : i32, i32
  }
}

</mosaic_0001>

<bundles_post_ra>
// kernel: tpu_custom_call.1
= control target key start
LH: loop header
LB: loop body
LE: loop exit
PB: predicated region body
PF: predicated region fallthrough
CT: control target
= control target key end

     0   :  { %10 = vsyncpa [#allocation4], 0  ;;  %s425_s0 = inlined_call_operand.hbm [shape: f32[12,256], index: 0, kind: input, shape index: {}]   ;;  %s426_s1 = inlined_call_operand.vmem [shape: f32[6,12], index: 1, kind: input, shape index: {}]   ;;  %s427_s2 = inlined_call_operand.vmem [shape: f32[1,12], index: 2, kind: input, shape index: {}]   ;;  %s428_s3 = inlined_call_operand.vmem [shape: f32[12,6], index: 3, kind: input, shape index: {}]   ;;  %s429_s4 = inlined_call_operand.vmem [shape: f32[1,6], index: 4, kind: input, shape index: {}]   ;;  %s430_s5 = inlined_call_operand.hbm [shape: f32[2,6], index: 5, kind: output, shape index: {}]  }
   0x1   :  { %11 = vsyncpa [#allocation5], 0  ;;  %s337_s18 = smov [#allocation3]   ;;  %s289_s22 = scalar_lea.hbm %s425_s0, 512 }
   0x2   :  { %s17_s19 = sshll.u32 %s337_s18, 4  ;;  %p290_p0 = scmp.ne.s32.totalorder %s425_s0, %s289_s22  ;;  %s18_s19 = int_to_ptr.vmem [resolvable:$true] %s17_s19 }
   0x3   :  { %p293_p1 = scmp.lt.u32.totalorder %s289_s22, %s425_s0 }
   0x5   :  { %p295_p2 = pnand %p293_p1, %p290_p0 }
   0x7   :  { %298 = shalt.err (!%p295_p2)
}
   0x8   :  { %s299_s27 = scalar_lea.vmem %s18_s19, 512  ;;  %p304_p4 = scmp.lt.s32.totalorder %s18_s19, %s18_s19 }
   0x9   :  { %p300_p3 = scmp.ne.s32.totalorder %s18_s19, %s299_s27  ;;  %p305_p5 = scmp.lt.s32.totalorder %s299_s27, %s299_s27 }
   0xb   :  { %p306_p6 = por %p305_p5, %p304_p4 }
   0xd   :  { %p307_p7 = pnand %p306_p6, %p300_p3 }
   0xf   :  { %310 = shalt.err (!%p307_p7)
}
  0x10   :  { %s338_s28 = smov 256   ;;  %s339_s29 = smov 16  }
  0x11   :  { %23 = dma.hbm_to_vmem [thread:$0]  %s425_s0, 512, %s18_s19, [#allocation4], %s338_s28, %s338_s28, %s339_s29  }
  0x12   :  { %333 = dma.done.wait [#allocation4], 512  }
  0x13   :  { %334 = vsyncadd [#allocation4], 4294966784  ;;  %vm39_vm0 = vcmask 7168   ;;  %v340_v0 = vmov 0.0   ;;  %vm52_vm1 = vcmask 1043456   ;;  %v43_v1 = vld [vmem:[#allocation3] sm:$0xff]  ;;  %v116_v55 = vlaneseq }
  0x14   :  { %40 = vst.msk [vmem:[#allocation2] sm:$0xff] %vm39_vm0, %v340_v0  ;;  %v44_v2 = vld [vmem:[#allocation3 + $0x8] sm:$0xff]  ;;  %v45_v3 = vld [vmem:[#allocation3 + $0x10] sm:$0xf]  ;;  %v46_v5 = vld [vmem:[#allocation3 + $0x18] sm:$0xf] }
  0x15   :  { %v49_v4 = vadd.f32 %v44_v2, %v43_v1  ;;  %v53_v6 = vsel %vm52_vm1, %v45_v3, 0.0  ;;  %v54_v7 = vsel %vm52_vm1, %v46_v5, 0.0  ;;  %vm41_vm2 = vcmask 3072   ;;  %v67_v19 = vld [vmem:[%s426_s1] sm:$0x3f]  ;;  %s353_s13 = smov [#allocation6]  }
  0x16   :  { %v55_v8 = vadd.f32 %v54_v7, %v53_v6  ;;  %42 = vst.msk [vmem:[#allocation2 + $0x8] sm:$0xf] %vm41_vm2, %v340_v0  ;;  %v341_v9 = vmov 0   ;;  %v342_v18 = vmov 1   ;;  %vm79_vm3 = vcmask 95232   ;;  %v69_v61 = vld [vmem:[%s428_s3] sm:$0xff] }
  0x17   :  { %50 = vadd.xlane.f32.xlu0 %v49_v4  ;;  %275 = vset.pattern.permute.xlu1 %v341_v9  ;;  %vm101_vm4 = vcmask 1040384   ;;  %v256_v37 = vld [vmem:[%s427_s2] ss:$0 sm:$0xff]  ;;  %v343_v42 = vmov 2   ;;  %v344_v43 = vmov 11   ;;  %v345_v44 = vmov 3  }
  0x18   :  { %276 = vset.pattern.permute.xlu0 %v341_v9  ;;  %v346_v45 = vmov 4   ;;  %v347_v46 = vmov 5   ;;  %v348_v47 = vmov 6   ;;  %v349_v48 = vmov 7   ;;  %s247_s14 = sshll.u32 %s353_s13, 4  ;;  %s248_s14 = int_to_ptr.vmem [resolvable:$true] %s247_s14 }
  0x19   :  { %v350_v49 = vmov 8   ;;  %v351_v50 = vmov 9   ;;  %v352_v51 = vmov 10   ;;  %v117_v57 = vshrl.u32 %v116_v55, 7  ;;  %s311_s15 = scalar_lea.vmem %s248_s14, 32  ;;  %p316_p9 = scmp.lt.s32.totalorder %s248_s14, %s248_s14 }
  0x1a   :  { %vm239_vm5 = vcmask 41984   ;;  %p312_p8 = scmp.ne.s32.totalorder %s248_s14, %s311_s15  ;;  %p317_p10 = scmp.lt.s32.totalorder %s311_s15, %s311_s15 }
  0x1b   :  { %56 = vadd.xlane.f32.xlu0 %v55_v8  ;;  %v47_v10 = vld [vmem:[#allocation2] sm:$0xff]  ;;  %v128_v59 = vsub.s32 1, %v117_v57  ;;  %v118_v60 = vsub.s32 0, %v117_v57  ;;  %v138_v62 = vsub.s32 2, %v117_v57  ;;  %v148_v1 = vsub.s32 3, %v117_v57 }
  0x1c   :  { %v158_v5 = vsub.s32 4, %v117_v57  ;;  %v168_v9 = vsub.s32 5, %v117_v57  ;;  %p318_p11 = por %p317_p10, %p316_p9 }
  0x1d   :  { %v48_v13 = vld [vmem:[#allocation2 + $0x8] sm:$0xf]  ;;  %v129_v63 = vrot.slane %v69_v61, %v128_v59  ;;  %v119_v0 = vrot.slane %v69_v61, %v118_v60  ;;  %v139_v4 = vrot.slane %v69_v61, %v138_v62  ;;  %v149_v8 = vrot.slane %v69_v61, %v148_v1 }
  0x1e   :  { %p319_p12 = pnand %p318_p11, %p312_p8 }
  0xa4   :  { %v51_v11 = vpop.xlane.xlu0 %50 }
  0xa5   :  { %v58_v12 = vadd.f32 %v51_v11, %v47_v10 }
  0xa7   :  { %61 = vst.msk [vmem:[#allocation2] sm:$0xff] %vm39_vm0, %v58_v12  ;;  %v159_v12 = vrot.slane %v69_v61, %v158_v5 }
  0xa8   :  { %v57_v14 = vpop.xlane.xlu0 %56 }
  0xa9   :  { %v59_v15 = vadd.f32 %v57_v14, %v48_v13  ;;  %v178_v13 = vsub.s32 6, %v117_v57 }
  0xab   :  { %63 = vst.msk [vmem:[#allocation2 + $0x8] sm:$0xf] %vm41_vm2, %v59_v15 }
  0xae   :  { %v72_v16 = vld [vmem:[#allocation2] sm:$0x3f] }
  0xaf   :  { %75 = vperm.xlu1 %275, %v72_v16   ;;  %v169_v16 = vrot.slane %v69_v61, %v168_v9 }
  0xb2   :  { %v87_v17 = vld [vmem:[#allocation2 + $0x6] sm:$0x3f] }
  0xb3   :  { %90 = vperm.xlu1 %275, %v87_v17   ;;  %v188_v17 = vsub.s32 7, %v117_v57 }
  0xb7   :  { %277 = vset.pattern.permute.xlu1 %v342_v18 }
 0x12e   :  { %v76_v20 = vpop.permute.xlu1 %75 }
 0x12f   :  { %v78_v21 = vmul.f32 %v76_v20, %v67_v19  ;;  %v179_v20 = vrot.slane %v69_v61, %v178_v13 }
 0x131   :  { %v80_v22 = vsel %vm79_vm3, %v78_v21, 0.0 }
 0x132   :  { %v81_v23 = vrot.slane %v80_v22, 4  ;;  %v91_v24 = vpop.permute.xlu1 %90 }
 0x133   :  { %v93_v25 = vmul.f32 %v91_v24, %v67_v19 }
 0x134   :  { %v82_v26 = vadd.f32 %v81_v23, %v80_v22  ;;  %v70_v22 = vld [vmem:[%s428_s3 + $0x8] sm:$0xf] }
 0x135   :  { %v94_v27 = vsel %vm79_vm3, %v93_v25, 0.0  ;;  %v189_v25 = vrot.slane %v69_v61, %v188_v17 }
 0x136   :  { %v83_v28 = vrot.slane %v82_v26, 2  ;;  %v95_v29 = vrot.slane %v94_v27, 4 }
 0x138   :  { %v84_v30 = vadd.f32 %v83_v28, %v82_v26  ;;  %v96_v31 = vadd.f32 %v95_v29, %v94_v27  ;;  %v199_v28 = vrot.slane %v70_v22, %v118_v60 }
 0x13a   :  { %v97_v32 = vrot.slane %v96_v31, 2  ;;  %v85_v33 = vrot.slane %v84_v30, 1 }
 0x13c   :  { %v98_v34 = vadd.f32 %v97_v32, %v96_v31  ;;  %v86_v36 = vadd.f32 %v85_v33, %v84_v30  ;;  %v209_v32 = vrot.slane %v70_v22, %v128_v59 }
 0x13e   :  { %v99_v35 = vrot.slane %v98_v34, 1 }
 0x140   :  { %v100_v38 = vadd.f32 %v99_v35, %v98_v34  ;;  %v219_v35 = vrot.slane %v70_v22, %v138_v62 }
 0x142   :  { %v102_v39 = vsel %vm101_vm4, %v86_v36, %v100_v38 }
 0x143   :  { %v109_v40 = vadd.f32 %v256_v37, %v102_v39 }
 0x145   :  { %v110_v41 = vmax.f32 %v109_v40, 0.0 }
 0x147   :  { %123 = vperm.xlu1 %277, %v110_v41   ;;  %113 = vperm.xlu0 %276, %v110_v41  }
 0x14b   :  { %278 = vset.pattern.permute.xlu1 %v343_v42  ;;  %288 = vset.pattern.permute.xlu0 %v344_v43 }
 0x14c   :  { %133 = vperm.xlu1 %278, %v110_v41  }
 0x150   :  { %279 = vset.pattern.permute.xlu1 %v345_v44 }
 0x151   :  { %143 = vperm.xlu1 %279, %v110_v41  }
 0x155   :  { %280 = vset.pattern.permute.xlu1 %v346_v45 }
 0x156   :  { %153 = vperm.xlu1 %280, %v110_v41  }
 0x15a   :  { %281 = vset.pattern.permute.xlu1 %v347_v46  ;;  %v257_v46 = vld [vmem:[%s429_s4] ss:$0 sm:$0xff] }
 0x15b   :  { %163 = vperm.xlu1 %281, %v110_v41  }
 0x15f   :  { %282 = vset.pattern.permute.xlu1 %v348_v47 }
 0x160   :  { %173 = vperm.xlu1 %282, %v110_v41  }
 0x164   :  { %283 = vset.pattern.permute.xlu1 %v349_v48 }
 0x165   :  { %183 = vperm.xlu1 %283, %v110_v41  }
 0x169   :  { %284 = vset.pattern.permute.xlu1 %v350_v49 }
 0x16a   :  { %193 = vperm.xlu1 %284, %v110_v41  }
 0x16e   :  { %285 = vset.pattern.permute.xlu1 %v351_v50 }
 0x16f   :  { %203 = vperm.xlu1 %285, %v110_v41  }
 0x173   :  { %286 = vset.pattern.permute.xlu1 %v352_v51 }
 0x174   :  { %213 = vperm.xlu1 %286, %v110_v41  }
 0x178   :  { %287 = vset.pattern.permute.xlu1 %v344_v43 }
 0x179   :  { %223 = vperm.xlu1 %287, %v110_v41   ;;  %v229_v41 = vrot.slane %v70_v22, %v148_v1 }
 0x1c6   :  { %v124_v52 = vpop.permute.xlu1 %123  ;;  %v114_v3 = vpop.permute.xlu0 %113 }
 0x1c7   :  { %v130_v6 = vmul.f32 %v129_v63, %v124_v52  ;;  %v120_v7 = vmul.f32 %v119_v0, %v114_v3 }
 0x1c9   :  { %v131_v14 = vadd.f32 %v130_v6, %v120_v7 }
 0x1cb   :  { %v134_v53 = vpop.permute.xlu1 %133 }
 0x1cc   :  { %v140_v11 = vmul.f32 %v139_v4, %v134_v53 }
 0x1ce   :  { %v141_v18 = vadd.f32 %v140_v11, %v131_v14 }
 0x1d0   :  { %v144_v54 = vpop.permute.xlu1 %143 }
 0x1d1   :  { %v150_v15 = vmul.f32 %v149_v8, %v144_v54 }
 0x1d3   :  { %v151_v23 = vadd.f32 %v150_v15, %v141_v18 }
 0x1d5   :  { %v154_v56 = vpop.permute.xlu1 %153 }
 0x1d6   :  { %v160_v19 = vmul.f32 %v159_v12, %v154_v56 }
 0x1d8   :  { %v161_v26 = vadd.f32 %v160_v19, %v151_v23 }
 0x1da   :  { %v164_v58 = vpop.permute.xlu1 %163 }
 0x1db   :  { %v170_v24 = vmul.f32 %v169_v16, %v164_v58 }
 0x1dd   :  { %v171_v30 = vadd.f32 %v170_v24, %v161_v26 }
 0x1df   :  { %v174_v2 = vpop.permute.xlu1 %173 }
 0x1e0   :  { %v180_v27 = vmul.f32 %v179_v20, %v174_v2 }
 0x1e2   :  { %v181_v33 = vadd.f32 %v180_v27, %v171_v30 }
 0x1e4   :  { %v184_v10 = vpop.permute.xlu1 %183 }
 0x1e5   :  { %v190_v31 = vmul.f32 %v189_v25, %v184_v10 }
 0x1e7   :  { %v191_v36 = vadd.f32 %v190_v31, %v181_v33 }
 0x1e9   :  { %v194_v21 = vpop.permute.xlu1 %193 }
 0x1ea   :  { %v200_v34 = vmul.f32 %v199_v28, %v194_v21 }
 0x1ec   :  { %v201_v39 = vadd.f32 %v200_v34, %v191_v36 }
 0x1ee   :  { %v204_v29 = vpop.permute.xlu1 %203 }
 0x1ef   :  { %v210_v37 = vmul.f32 %v209_v32, %v204_v29 }
 0x1f1   :  { %v211_v42 = vadd.f32 %v210_v37, %v201_v39 }
 0x1f3   :  { %v214_v38 = vpop.permute.xlu1 %213 }
 0x1f4   :  { %v220_v40 = vmul.f32 %v219_v35, %v214_v38 }
 0x1f6   :  { %v221_v44 = vadd.f32 %v220_v40, %v211_v42 }
 0x1f8   :  { %v224_v43 = vpop.permute.xlu1 %223 }
 0x1f9   :  { %v230_v45 = vmul.f32 %v229_v41, %v224_v43 }
 0x1fb   :  { %v231_v47 = vadd.f32 %v230_v45, %v221_v44 }
 0x1fd   :  { %v238_v48 = vadd.f32 %v257_v46, %v231_v47 }
 0x1ff   :  { %240 = vst.msk [vmem:[#allocation6] sm:$0x3] %vm239_vm5, %v238_v48 }
 0x200   :  { %322 = shalt.err (!%p319_p12)
}
 0x201   :  { %s323_s18 = scalar_lea.hbm %s430_s5, 32 }
 0x202   :  { %p324_p13 = scmp.ne.s32.totalorder %s430_s5, %s323_s18  ;;  %p327_p0 = scmp.lt.u32.totalorder %s323_s18, %s430_s5 }
 0x204   :  { %p329_p1 = pnand %p327_p0, %p324_p13 }
 0x206   :  { %332 = shalt.err (!%p329_p1)
}
 0x207   :  { %250 = dma.vmem_to_hbm [thread:$0]  %s248_s14, 32, %s430_s5, [#allocation5]  }
 0x208   :  { %335 = dma.done.wait [#allocation5], 32  }
 0x209   :  { %336 = vsyncadd [#allocation5], 4294967264 }
 0x20a   :  { %254 = vsyncpa [#allocation4], 1 }
 0x20b   :  { %255 = vsyncpa [#allocation5], 1 }

</bundles_post_ra>
